<compile_context>
chip_gen: v7x
topology: tpu7x:2x2x1
jax: 0.10.0
libtpu: 0.0.40
codegen_flags: <defaults>
</compile_context>

<pallas_src>
import random

import jax
import jax.numpy as jnp
from jax import lax
from jax.experimental import pallas as pl
from jax.experimental.pallas import tpu as pltpu

_LANE = 128
_SUBLANE32 = 8                          # sublane tile for 32-bit dtypes
_TINY_ROW_ELEMS = _SUBLANE32 * _LANE    # below this, fused XLA beats B grid steps


def _cdiv(a: int, b: int) -> int:
    return -(-a // b)


def _round_up(a: int, b: int) -> int:
    return _cdiv(a, b) * b


def _sublane_multiple(dtype) -> int:
    # Sub-32-bit dtypes pack along sublanes: 8 for 4-byte, 16 for 2-byte, 32 for 1-byte.
    return max(_SUBLANE32, (4 * _SUBLANE32) // jnp.dtype(dtype).itemsize)


def _vmem_capacity_bytes() -> int:
    """Generation-aware VMEM size (128 MiB v5e/v6e, 64 MiB per-TC v7x)."""
    try:
        return int(pltpu.get_tpu_info().vmem_capacity_bytes)
    except Exception:
        return 64 * 1024 * 1024  # conservative default (v7x per-TC VMEM)


def _vmem_limit_bytes(work_bytes: int, capacity: int) -> int:
    """Scoped-VMEM limit covering the double-buffered working set + headroom."""
    return int(min(capacity - (2 << 20), max(work_bytes + (4 << 20), 32 << 20)))


# --------------------------------------------------------------------------- #
# Kernels
# --------------------------------------------------------------------------- #
def _mixup_slab_kernel(perm_ref, lbd_ref, x_ref, o_ref):
    """Grid step f: whole-batch f-tile resident in VMEM; gather perm[b] in-kernel.

    perm_ref : SMEM int32 (B,)        scalar-prefetched permutation
    lbd_ref  : SMEM f32   (1,)        scalar-prefetched mixing coefficient
    x_ref    : VMEM (B, s_tile, 128)  f-tile of the whole batch (read once)
    o_ref    : VMEM (B, s_tile, 128)
    """
    lbd = lbd_ref[0]
    one_m = 1.0 - lbd
    nb = x_ref.shape[0]

    def body(b, carry):
        xv = x_ref[b].astype(jnp.float32)             # (s_tile, 128)
        xp = x_ref[perm_ref[b]].astype(jnp.float32)   # (s_tile, 128), VMEM gather
        o_ref[b] = (xv * lbd + xp * one_m).astype(o_ref.dtype)
        return carry

    lax.fori_loop(0, nb, body, 0)


def _mixup_rowtile_kernel(perm_ref, lbd_ref, x_ref, xperm_ref, o_ref):
    """Grid step (b, f): mix f-tile of row b with the same f-tile of row perm[b]."""
    lbd = lbd_ref[0]
    xv = x_ref[...].astype(jnp.float32)
    xp = xperm_ref[...].astype(jnp.float32)
    o_ref[...] = (xv * lbd + xp * (1.0 - lbd)).astype(o_ref.dtype)


# --------------------------------------------------------------------------- #
# pallas_call wrappers
# --------------------------------------------------------------------------- #
def _mixup_pallas_slab(x3d, perm, lbd, s_tile, n_f, vmem_limit):
    B, S, L = x3d.shape
    grid_spec = pltpu.PrefetchScalarGridSpec(
        num_scalar_prefetch=2,          # perm, lbd land in SMEM
        grid=(n_f,),
        in_specs=[
            pl.BlockSpec((B, s_tile, L), lambda f, perm_ref, lbd_ref: (0, f, 0)),
        ],
        out_specs=pl.BlockSpec((B, s_tile, L), lambda f, perm_ref, lbd_ref: (0, f, 0)),
    )
    return pl.pallas_call(
        _mixup_slab_kernel,
        out_shape=jax.ShapeDtypeStruct((B, S, L), x3d.dtype),
        grid_spec=grid_spec,
        compiler_params=pltpu.CompilerParams(
            # Independent f-tiles.
            # TODO(synk): verify in xprof that v7x shards this grid across both
            #             TensorCores; if not, switch to pltpu.CORE_PARALLEL.
            dimension_semantics=("parallel",),
            vmem_limit_bytes=vmem_limit,
        ),
    )(perm, lbd, x3d)


def _mixup_pallas_rowtile(x3d, perm, lbd, s_tile, n_f, vmem_limit):
    B, S, L = x3d.shape
    grid_spec = pltpu.PrefetchScalarGridSpec(
        num_scalar_prefetch=2,
        grid=(B, n_f),
        in_specs=[
            # f-tile of row b
            pl.BlockSpec((1, s_tile, L), lambda b, f, perm_ref, lbd_ref: (b, f, 0)),
            # f-tile of row perm[b] (data-dependent gather via index_map)
            # TODO(synk): set pipeline_mode=pl.Buffered(3) on this operand if
            #             xprof shows exposed DMA latency on the gathered row.
            pl.BlockSpec(
                (1, s_tile, L),
                lambda b, f, perm_ref, lbd_ref: (perm_ref[b], f, 0),
            ),
        ],
        out_specs=pl.BlockSpec((1, s_tile, L), lambda b, f, perm_ref, lbd_ref: (b, f, 0)),
    )
    return pl.pallas_call(
        _mixup_rowtile_kernel,
        out_shape=jax.ShapeDtypeStruct((B, S, L), x3d.dtype),
        grid_spec=grid_spec,
        compiler_params=pltpu.CompilerParams(
            dimension_semantics=("parallel", "parallel"),
            vmem_limit_bytes=vmem_limit,
        ),
    )(perm, lbd, x3d, x3d)


# --------------------------------------------------------------------------- #
# Dispatch / layout plumbing
# --------------------------------------------------------------------------- #
def _mix_array(arr, perm, lbd, *, force_path=None, s_tile_cap=None):
    """Mix `arr` along the batch dim: lbd*arr + (1-lbd)*arr[perm]."""
    orig_shape = arr.shape
    B = orig_shape[0]
    F = 1
    for d in orig_shape[1:]:
        F *= d

    use_jnp = (force_path == "jnp") or (force_path is None and F < _TINY_ROW_ELEMS)
    if use_jnp:
        lbd32 = lbd.astype(jnp.float32)
        mixed = arr.astype(jnp.float32) * lbd32 + arr[perm].astype(jnp.float32) * (1.0 - lbd32)
        return mixed.astype(arr.dtype)

    perm = perm.astype(jnp.int32)
    lbd = jnp.reshape(lbd.astype(jnp.float32), (1,))  # keep lambda in f32 in SMEM

    itemsize = jnp.dtype(arr.dtype).itemsize
    sub = _sublane_multiple(arr.dtype)

    flat = arr.reshape(B, F)
    if F % _LANE != 0:
        # TODO(synk): handle the <128-column tail with an in-kernel masked store
        #             instead of this pad/slice copy (only hit when F % 128 != 0).
        f_pad = _round_up(F, _LANE)
        flat = jnp.pad(flat, ((0, 0), (0, f_pad - F)))
    else:
        f_pad = F
    S = f_pad // _LANE
    x3d = flat.reshape(B, S, _LANE)  # free reshape: trailing-dim split only

    capacity = _vmem_capacity_bytes()

    # --- column-slab path: whole-batch f-tile resident, x read from HBM once ---
    slab_budget = min(24 << 20, capacity // 4)   # ~24 MiB v5e/v6e, ~16 MiB v7x
    per_sub_bytes = B * _LANE * itemsize         # one sublane-row across the batch
    # Per-step working set = (x_in + out) x 2 pipeline buffers = 4 blocks.
    max_s_tile = ((slab_budget // 4) // per_sub_bytes // sub) * sub
    full_fits = (slab_budget // 4) >= S * per_sub_bytes
    slab_ok = full_fits or max_s_tile >= sub

    use_slab = (force_path == "slab") or (force_path is None and slab_ok)
    if use_slab:
        s_tile = S if full_fits else max(sub, max_s_tile)
        if s_tile_cap is not None:
            s_tile = min(s_tile, s_tile_cap)
        s_tile = min(s_tile, S)
        if s_tile < S:
            s_tile = max(sub, (s_tile // sub) * sub)   # keep dtype-aware sublane tile
        n_f = _cdiv(S, s_tile)
        work = 4 * B * s_tile * _LANE * itemsize
        out3d = _mixup_pallas_slab(
            x3d, perm, lbd, s_tile, n_f, _vmem_limit_bytes(work, capacity))
    else:
        # --- per-row fallback for very large batches (reads x twice) ---
        # TODO(synk): replace with a multi-row P4 manual-DMA gather variant to
        #             amortize per-step overhead for large-B / small-F shapes.
        block_target = min(2 << 20, max(1 << 20, capacity // 32))   # 1-2 MiB blocks
        s_tile = max(sub, ((block_target // (_LANE * itemsize)) // sub) * sub)
        if s_tile_cap is not None:
            s_tile = min(s_tile, s_tile_cap)
        s_tile = min(s_tile, S)
        if s_tile < S:
            s_tile = max(sub, (s_tile // sub) * sub)
        n_f = _cdiv(S, s_tile)
        work = 6 * s_tile * _LANE * itemsize          # 3 arrays x 2 buffers
        out3d = _mixup_pallas_rowtile(
            x3d, perm, lbd, s_tile, n_f, _vmem_limit_bytes(work, capacity))

    out = out3d.reshape(B, f_pad)
    if f_pad != F:
        out = out[:, :F]
    return out.reshape(orig_shape)


# --------------------------------------------------------------------------- #
# Module-level API (mirrors the PyTorch Mixup module)
# --------------------------------------------------------------------------- #
def sample_lambda(key, alpha: float, asymmetric: bool, size=()) -> jax.Array:
    """JAX equivalent of the reference sample_lambda()."""
    size = tuple(size)
    if alpha == 0.0:
        if asymmetric:
            return jnp.full(size, 1.0, dtype=jnp.float32)
        return (jax.random.uniform(key, size) >= 0.5).astype(jnp.float32)
    lbd = jax.random.beta(key, alpha, alpha, shape=size, dtype=jnp.float32)
    if asymmetric:
        lbd = jnp.maximum(lbd, 1.0 - lbd)
    return lbd


class Mixup:
    """Pallas-backed Mixup; mirrors the PyTorch module's forward."""

    def __init__(self, alpha: float = 0.4, asymmetric: bool = False, p: float = 1.0):
        assert 0.0 <= p <= 1.0
        self.alpha = alpha
        self.asymmetric = asymmetric
        self.p = p

    def __call__(self, key, x: jax.Array, y: jax.Array):
        # Python-level Bernoulli(p), matching `random.random() < self.p`.
        if self.p >= 1.0 or random.random() < self.p:
            return self.apply_transform(key, x, y)
        return x, y

    def apply_transform(self, key, x: jax.Array, y: jax.Array):
        if x.shape[0] != y.shape[0]:
            raise ValueError(
                f"Data to mix must have the same size along the first dim. "
                f"(x.shape[0]={x.shape[0]!r} != y.shape[0]={y.shape[0]!r})"
            )
        bsize = x.shape[0]
        k_lbd, k_perm = jax.random.split(key)
        lbd = sample_lambda(k_lbd, self.alpha, self.asymmetric, ())
        perm = jax.random.permutation(k_perm, bsize)
        x_out = _mix_array(x, perm, lbd)   # Pallas slab kernel (lane-dense payload)
        y_out = _mix_array(y, perm, lbd)   # tiny label matrix -> fused XLA op
        return x_out, y_out


if __name__ == "__main__":
    random.seed(0)
    key = jax.random.PRNGKey(0)
    k_x, k_y, k_mix = jax.random.split(key, 3)

    # x: NCHW batch of "images", y: one-hot-ish label matrix.
    B, C, H, W = 2, 4, 16, 16
    NUM_CLASSES = 32
    x = jax.random.normal(k_x, (B, C, H, W), dtype=jnp.float32)
    y = jax.random.uniform(k_y, (B, NUM_CLASSES), dtype=jnp.float32)

    mixup = Mixup(alpha=0.4, asymmetric=False, p=1.0)
    x_out, y_out = mixup(k_mix, x, y)
    jax.block_until_ready((x_out, y_out))

    # Cross-check against a pure-JAX reference using the same lambda / perm.
    k_lbd, k_perm = jax.random.split(k_mix)
    lbd_ref = sample_lambda(k_lbd, mixup.alpha, mixup.asymmetric, ())
    perm_ref = jax.random.permutation(k_perm, B)
    x_exp = x * lbd_ref + x[perm_ref] * (1.0 - lbd_ref)
    y_exp = y * lbd_ref + y[perm_ref] * (1.0 - lbd_ref)
    assert jnp.allclose(x_out, x_exp, atol=1e-6)
    assert jnp.allclose(y_out, y_exp, atol=1e-6)
    assert x_out.shape == x.shape and x_out.dtype == x.dtype
    assert y_out.shape == y.shape and y_out.dtype == y.dtype

    # Slab path with multiple f-tiles and an uneven boundary block
    # (F multiple of 128 -> no pad copy; S=20 not divisible by forced s_tile=8).
    x_a = jax.random.normal(k_x, (4, 20, 128), dtype=jnp.float32)     # F = 2560
    perm_a = jax.random.permutation(k_perm, 4).astype(jnp.int32)
    ref_a = x_a * lbd_ref + x_a[perm_a] * (1.0 - lbd_ref)
    out_a = _mix_array(x_a, perm_a, lbd_ref, force_path="slab", s_tile_cap=8)
    assert jnp.allclose(out_a, ref_a, atol=1e-6)

    # Misaligned F (2240) exercises the pad path; also check the per-row
    # tiled fallback on the same data.
    x_b = jax.random.normal(k_y, (3, 5, 7, 64), dtype=jnp.float32)    # F = 2240
    perm_b = jax.random.permutation(k_perm, 3).astype(jnp.int32)
    ref_b = x_b * lbd_ref + x_b[perm_b] * (1.0 - lbd_ref)
    out_b_slab = _mix_array(x_b, perm_b, lbd_ref, force_path="slab", s_tile_cap=8)
    out_b_row = _mix_array(x_b, perm_b, lbd_ref, force_path="rowtile", s_tile_cap=8)
    jax.block_until_ready((out_a, out_b_slab, out_b_row))
    assert jnp.allclose(out_b_slab, ref_b, atol=1e-6)
    assert jnp.allclose(out_b_row, ref_b, atol=1e-6)

    # bf16 payload (dtype-aware sublane multiple of 16).
    x_c = jax.random.normal(k_x, (2, 8, 16, 16), dtype=jnp.bfloat16)  # F = 2048
    perm_c = jnp.array([1, 0], dtype=jnp.int32)
    ref_c = (x_c.astype(jnp.float32) * lbd_ref
             + x_c[perm_c].astype(jnp.float32) * (1.0 - lbd_ref)).astype(jnp.bfloat16)
    out_c = _mix_array(x_c, perm_c, lbd_ref)
    jax.block_until_ready(out_c)
    assert jnp.allclose(out_c.astype(jnp.float32), ref_c.astype(jnp.float32), atol=2e-2)
    assert out_c.dtype == x_c.dtype

    print("KERNEL_OK")
</pallas_src>

<mosaic_0001>
module attributes {stable_mosaic.version = 11 : i64} {
  func.func @_mixup_slab_kernel(%arg0: i32, %arg1: memref<2xi32, #tpu.memory_space<smem>>, %arg2: memref<1xf32, #tpu.memory_space<smem>>, %arg3: memref<2x8x128xf32, #tpu.memory_space<vmem>>, %arg4: memref<2x8x128xf32, #tpu.memory_space<vmem>>) attributes {dimension_semantics = [#tpu.dimension_semantics<parallel>], iteration_bounds = array<i64: 1>, scalar_prefetch = 2 : i64, scratch_operands = 0 : i64, tpu.core_type = #tpu.core_type<tc>, window_params = [{transform_indices = @transform_0, window_bounds = array<i64: 2, 8, 128>}, {transform_indices = @transform_1, window_bounds = array<i64: 2, 8, 128>}]} {
    %c0 = arith.constant 0 : index
    %0 = memref.load %arg2[%c0] : memref<1xf32, #tpu.memory_space<smem>>
    %cst = arith.constant 1.000000e+00 : f32
    %1 = arith.subf %cst, %0 : f32
    %c0_i32 = arith.constant 0 : i32
    %c2_i32 = arith.constant 2 : i32
    %2 = arith.addi %c0_i32, %c2_i32 : i32
    %c1_i32 = arith.constant 1 : i32
    scf.for %arg5 = %c0_i32 to %2 step %c1_i32  : i32 {
      %3 = arith.index_cast %arg5 : i32 to index
      %c0_1 = arith.constant 0 : index
      %c0_2 = arith.constant 0 : index
      %4 = vector.load %arg3[%3, %c0_1, %c0_2] : memref<2x8x128xf32, #tpu.memory_space<vmem>>, vector<1x8x128xf32>
      %5 = vector.shape_cast %4 : vector<1x8x128xf32> to vector<8x128xf32>
      %6 = arith.index_cast %arg5 : i32 to index
      %7 = memref.load %arg1[%6] : memref<2xi32, #tpu.memory_space<smem>>
      %8 = arith.index_cast %7 : i32 to index
      %c0_3 = arith.constant 0 : index
      %c0_4 = arith.constant 0 : index
      %9 = vector.load %arg3[%8, %c0_3, %c0_4] : memref<2x8x128xf32, #tpu.memory_space<vmem>>, vector<1x8x128xf32>
      %10 = vector.shape_cast %9 : vector<1x8x128xf32> to vector<8x128xf32>
      %11 = vector.broadcast %0 : f32 to vector<8x128xf32>
      %12 = arith.mulf %5, %11 : vector<8x128xf32>
      %13 = vector.broadcast %1 : f32 to vector<8x128xf32>
      %14 = arith.mulf %10, %13 : vector<8x128xf32>
      %15 = arith.addf %12, %14 : vector<8x128xf32>
      %16 = arith.index_cast %arg5 : i32 to index
      %c0_5 = arith.constant 0 : index
      %c0_6 = arith.constant 0 : index
      %17 = vector.load %arg4[%16, %c0_5, %c0_6] : memref<2x8x128xf32, #tpu.memory_space<vmem>>, vector<1x8x128xf32>
      %18 = vector.shape_cast %17 : vector<1x8x128xf32> to vector<8x128xf32>
      %19 = vector.shape_cast %15 : vector<8x128xf32> to vector<1x8x128xf32>
      tpu.vector_store %arg4[%16, %c0_5, %c0_6], %19 {strides = array<i32>} : memref<2x8x128xf32, #tpu.memory_space<vmem>>, vector<1x8x128xf32>,
    }
    %c2_i32_0 = arith.constant 2 : i32
    return
  }
  func.func @transform_0(%arg0: i32, %arg1: memref<2xi32, #tpu.memory_space<smem>>, %arg2: memref<1xf32, #tpu.memory_space<smem>>) -> (i32, i32, i32) {
    %c0_i32 = arith.constant 0 : i32
    %c0_i32_0 = arith.constant 0 : i32
    %c0_i32_1 = arith.constant 0 : i32
    return %c0_i32, %arg0, %c0_i32_0 : i32, i32, i32
  }
  func.func @transform_1(%arg0: i32, %arg1: memref<2xi32, #tpu.memory_space<smem>>, %arg2: memref<1xf32, #tpu.memory_space<smem>>) -> (i32, i32, i32) {
    %c0_i32 = arith.constant 0 : i32
    %c0_i32_0 = arith.constant 0 : i32
    %c0_i32_1 = arith.constant 0 : i32
    return %c0_i32, %arg0, %c0_i32_0 : i32, i32, i32
  }
}

</mosaic_0001>

<bundles_post_ra>
// kernel: tpu_custom_call.1
= control target key start
LH: loop header
LB: loop body
LE: loop exit
PB: predicated region body
PF: predicated region fallthrough
CT: control target
= control target key end

     0   :  { %s231_s0 = inlined_call_operand.vmem [shape: s32[2], index: 0, kind: input, shape index: {}]   ;;  %s232_s1 = inlined_call_operand.<no memory space> [shape: f32[1], index: 1, kind: input, shape index: {}]   ;;  %s233_s2 = inlined_call_operand.hbm [shape: f32[2,8,128], index: 2, kind: input, shape index: {}]   ;;  %s234_s3 = inlined_call_operand.hbm [shape: f32[2,8,128], index: 3, kind: output, shape index: {}]  }
   0x1   :  { %s8_s14 = sshll.u32 %s231_s0, 4  ;;  %s9_s14 = int_to_ptr.vmem [resolvable:$true] %s8_s14 }
   0x2   :  { %s97_s15 = scalar_lea.vmem %s9_s14, 16  ;;  %p102_p1 = scmp.lt.s32.totalorder %s9_s14, %s9_s14 }
   0x3   :  { %p98_p0 = scmp.ne.s32.totalorder %s9_s14, %s97_s15  ;;  %p103_p2 = scmp.lt.s32.totalorder %s97_s15, %s97_s15 }
   0x5   :  { %p104_p3 = por %p103_p2, %p102_p1 }
   0x7   :  { %p105_p4 = pnand %p104_p3, %p98_p0 }
   0x9   :  { %108 = shalt.err (!%p105_p4)  }
   0xa   :  { %s167_s16 = smov [#allocation3]  }
   0xb   :  { %11 = dma.vmem_to_smem %s9_s14, 16, %s167_s16, [#allocation2] }
   0xc   :  { %157 = dma.done.wait [#allocation2], 16 }
   0xd   :  { %158 = vsyncadd [#allocation2], 4294967280 }
   0xe   :  { %14 = sfence }
   0xf   :  { %15 = vsyncpa [#allocation6], 0 }
  0x10   :  { %16 = vsyncpa [#allocation7], 0  ;;  %s168_s17 = smov [#allocation5]   ;;  %s109_s20 = scalar_lea.hbm %s233_s2, 256 }
  0x11   :  { %s22_s18 = sshll.u32 %s168_s17, 4  ;;  %p110_p5 = scmp.ne.s32.totalorder %s233_s2, %s109_s20  ;;  %s23_s18 = int_to_ptr.vmem [resolvable:$true] %s22_s18 }
  0x12   :  { %p113_p6 = scmp.lt.u32.totalorder %s109_s20, %s233_s2 }
  0x14   :  { %p115_p7 = pnand %p113_p6, %p110_p5 }
  0x16   :  { %118 = shalt.err (!%p115_p7)
}
  0x17   :  { %s119_s25 = scalar_lea.vmem %s23_s18, 256  ;;  %p124_p9 = scmp.lt.s32.totalorder %s23_s18, %s23_s18 }
  0x18   :  { %p120_p8 = scmp.ne.s32.totalorder %s23_s18, %s119_s25  ;;  %p125_p10 = scmp.lt.s32.totalorder %s119_s25, %s119_s25 }
  0x1a   :  { %p126_p11 = por %p125_p10, %p124_p9 }
  0x1c   :  { %p127_p12 = pnand %p126_p11, %p120_p8 }
  0x1e   :  { %130 = shalt.err (!%p127_p12)
}
  0x1f   :  { %s169_s26 = smov 128   ;;  %s170_s27 = smov 8  }
  0x20   :  { %28 = dma.hbm_to_vmem [thread:$0]  %s233_s2, 256, %s23_s18, [#allocation6], %s169_s26, %s169_s26, %s170_s27  }
  0x21   :  { %159 = dma.done.wait [#allocation6], 256  }
  0x22   :  { %160 = vsyncadd [#allocation6], 4294967040  ;;  %s33_s5 = ssub.f32 1.0, %s232_s1  ;;  %s163_s6 = smov 0  }
  0x23 LB: > { %s82_s7 = sshll.u32 %s165_s6, 3  ;;  %s43_s8 = sld [smem:[#allocation3 + %s165_s6]]  ;;  %v47_v1 = vstv %s232_s1  ;;  %s165_s6 = sphi %s163_s6, %s39_s6  }
  0x24   : > { %s41_s9 = scalar_lea.vmem [#allocation5], %s82_s7  ;;  %v49_v2 = vstv %s33_s5  ;;  %s52_s13 = scalar_lea.vmem [#allocation8], %s82_s7 }
  0x25   : > { %v42_v0 = vld [vmem:[%s41_s9] sm:$0xff]  ;;  %s39_s6 = sadd.s32 1, %s165_s6  }
  0x26   : > { %v48_v3 = vmul.f32 %v47_v1, %v42_v0  ;;  %p36_p13 = scmp.ge.s32.totalorder %s39_s6, 2  }
  0x27   :  { %s171_s14 = smov (%p36_p13), [#allocation8]  }
  0x28   :  { %s59_s15 = sshll.u32 (%p36_p13), %s171_s14, 4  ;;  %s60_s15 = int_to_ptr.vmem [resolvable:$true] %s59_s15 }
  0x29   : > { %s83_s12 = sshll.u32 %s43_s8, 3  ;;  %s131_s16 = scalar_lea.vmem (%p36_p13), %s60_s15, 256 }
  0x2a   : > { %s45_s2 = scalar_lea.vmem [#allocation5], %s83_s12  ;;  %38 = sbr.rel (!%p36_p13) target bundleno = 35 (0x23), region = 38 }
  0x2b   : > { %v46_v4 = vld [vmem:[%s45_s2] sm:$0xff]  ;;  %p132_p0 = scmp.ne.s32.totalorder (%p36_p13), %s60_s15, %s131_s16  ;;  %p136_p1 = scmp.lt.s32.totalorder (%p36_p13), %s60_s15, %s60_s15 }
  0x2c   : > { %v50_v5 = vmul.f32 %v49_v2, %v46_v4  ;;  %p137_p2 = scmp.lt.s32.totalorder (%p36_p13), %s131_s16, %s131_s16 }
  0x2e   : > { %v51_v6 = vadd.f32 %v50_v5, %v48_v3  ;;  %p138_p3 = por (%p36_p13), %p137_p2, %p136_p1 }
  0x30   : > { %53 = vst [vmem:[%s52_s13] sm:$0xff] %v51_v6  ;;  %p139_p4 = pnand (%p36_p13), %p138_p3, %p132_p0 }
  0x32   :  { %142 = shalt.err (!%p139_p4)
}
  0x33   :  { %s143_s19 = scalar_lea.hbm %s234_s3, 256 }
  0x34   :  { %p144_p5 = scmp.ne.s32.totalorder %s234_s3, %s143_s19  ;;  %p147_p6 = scmp.lt.u32.totalorder %s143_s19, %s234_s3 }
  0x36   :  { %p149_p7 = pnand %p147_p6, %p144_p5 }
  0x38   :  { %152 = shalt.err (!%p149_p7)
}
  0x39   :  { %65 = dma.vmem_to_hbm [thread:$0]  %s60_s15, 256, %s234_s3, [#allocation7], %s169_s26, %s169_s26, %s170_s27  }
  0x3a   :  { %161 = dma.done.wait [#allocation7], 256  }
  0x3b   :  { %162 = vsyncadd [#allocation7], 4294967040 }
  0x3c   :  { %69 = vsyncpa [#allocation6], 1 }
  0x3d   :  { %70 = vsyncpa [#allocation7], 1 }

</bundles_post_ra>
